<compile_context>
chip_gen: v5e
topology: v5e:2x2
jax: 0.10.0
libtpu: 0.0.40
codegen_flags: <defaults>
</compile_context>

<pallas_src>
import jax
import jax.numpy as jnp
from jax.experimental import pallas as pl
from jax.experimental.pallas import tpu as pltpu


def _coord_att_kernel(x_ref, gcf_ref, gct_ref, o_ref):
    # x_ref:   (1, cb, F, Tb)
    # gcf_ref: (1, cb, F, 1)   -> gate over frequency, broadcast along T (lanes)
    # gct_ref: (1, cb, 1, Tb)  -> gate over time, broadcast along F (sublanes)
    a_f = jax.nn.sigmoid(gcf_ref[...].astype(jnp.float32))   # once/block (EUP)
    a_t = jax.nn.sigmoid(gct_ref[...].astype(jnp.float32))
    if x_ref.dtype == jnp.bfloat16:
        # bf16 VALU on v6e/v7x: 2 VPU muls/elem, half the vreg traffic.
        # TODO(synk): v5e has no bf16 VALU; Mosaic widens internally there.
        out = x_ref[...] * a_f.astype(jnp.bfloat16) * a_t.astype(jnp.bfloat16)
    else:
        out = x_ref[...].astype(jnp.float32) * a_f * a_t
    o_ref[...] = out.astype(o_ref.dtype)


def _pick_blocks(B, C, F, T, itemsize, target_tile_bytes, vmem_limit_bytes):
    """Choose (channel block cb, time block tb, num time steps nt)."""
    LANE = 128
    # Time block: full T if a single-channel slab fits the budget, otherwise a
    # multiple of 128 (lane-dense stores for every non-ragged tile).
    if F * T * itemsize <= target_tile_bytes or T <= LANE:
        tb = T
    else:
        tb = (target_tile_bytes // (F * itemsize)) // LANE * LANE
        tb = max(LANE, min(tb, T))
    nt = pl.cdiv(T, tb)

    fpad = -(-F // 8) * 8
    tpad = -(-tb // LANE) * LANE

    def slab_bytes(cb):
        # One (not yet double-buffered) set of blocks: x + out + padded gates.
        x_b = cb * F * tb * itemsize
        gcf_b = cb * fpad * LANE * itemsize      # (1,cb,F,1) lane-padded 1->128
        gct_b = cb * 8 * tpad * itemsize         # (1,cb,1,tb) sublane-padded 1->8
        return 2 * x_b + gcf_b + gct_b

    vmem_budget = int(0.8 * vmem_limit_bytes)
    divisors = [d for d in range(C, 0, -1) if C % d == 0]
    fitting = [d for d in divisors
               if d * F * tb * itemsize <= target_tile_bytes
               and 2 * slab_bytes(d) <= vmem_budget] or [1]

    def steps(d):
        return B * (C // d) * nt

    cb = fitting[0]
    # Keep at least 2 grid steps when possible (2 TensorCores on v7x) ...
    if steps(cb) < 2:
        for d in fitting:
            if steps(d) >= 2:
                cb = d
                break
    # ... and prefer an even step count for small grids so both TCs finish together.
    if steps(cb) < 8 and steps(cb) % 2 == 1:
        for d in fitting:
            if steps(d) >= 2 and steps(d) % 2 == 0:
                cb = d
                break
    return cb, tb, nt


def coord_att(x, g, *, target_tile_bytes=8 << 20, vmem_limit_bytes=48 << 20,
              donate_x=False):
    """Pallas implementation of CoordAtt.forward(x, g). x: (B, C, F, T)."""
    g_cf, g_ct = g[1], g[2]
    B, C, F, T = x.shape
    assert g_cf.shape == (B, C, F, 1)
    assert g_ct.shape == (B, C, 1, T)

    cb, tb, nt = _pick_blocks(B, C, F, T, x.dtype.itemsize,
                              target_tile_bytes, vmem_limit_bytes)
    grid = (B, C // cb, nt)

    cost = pl.CostEstimate(
        flops=2 * B * C * F * T,
        transcendentals=B * C * (F + T),
        bytes_accessed=(2 * B * C * F * T * x.dtype.itemsize
                        + B * C * F * g_cf.dtype.itemsize
                        + B * C * T * g_ct.dtype.itemsize),
    )

    return pl.pallas_call(
        _coord_att_kernel,
        out_shape=jax.ShapeDtypeStruct((B, C, F, T), x.dtype),
        grid=grid,
        in_specs=[
            pl.BlockSpec((1, cb, F, tb), lambda b, c, t: (b, c, 0, t)),
            pl.BlockSpec((1, cb, F, 1), lambda b, c, t: (b, c, 0, 0)),
            pl.BlockSpec((1, cb, 1, tb), lambda b, c, t: (b, c, 0, t)),
        ],
        out_specs=pl.BlockSpec((1, cb, F, tb), lambda b, c, t: (b, c, 0, t)),
        compiler_params=pltpu.CompilerParams(
            dimension_semantics=("parallel", "parallel", "parallel"),
            vmem_limit_bytes=vmem_limit_bytes,
        ),
        cost_estimate=cost,
        input_output_aliases={0: 0} if donate_x else {},
    )(x, g_cf, g_ct)


def coord_att_ref(x, g):
    """Pure-JAX reference matching the PyTorch forward exactly."""
    g_cf, g_ct = g[1], g[2]
    return x * jax.nn.sigmoid(g_cf) * jax.nn.sigmoid(g_ct)


if __name__ == "__main__":
    root = jax.random.PRNGKey(0)

    def run_case(B, C, F, T, case_id, dtype=jnp.float32, tol=1e-6, **kw):
        key = jax.random.fold_in(root, case_id)
        kx, k0, k1, k2 = jax.random.split(key, 4)
        x = jax.random.normal(kx, (B, C, F, T), dtype=jnp.float32).astype(dtype)
        # g mirrors the tuple produced by the dynamic-conv context in dy_block:
        # g[0] is unused by CoordAtt.forward; g[1]/g[2] are the coord gates.
        g = (
            jax.random.normal(k0, (B, C, 1, 1), dtype=jnp.float32).astype(dtype),
            jax.random.normal(k1, (B, C, F, 1), dtype=jnp.float32).astype(dtype),
            jax.random.normal(k2, (B, C, 1, T), dtype=jnp.float32).astype(dtype),
        )
        out = jax.block_until_ready(coord_att(x, g, **kw))
        ref = coord_att_ref(x, g)
        assert out.shape == (B, C, F, T) and out.dtype == dtype
        assert jnp.allclose(out.astype(jnp.float32), ref.astype(jnp.float32),
                            atol=tol, rtol=tol), f"case {case_id} mismatch"

    # Original tiny shape (full-F/T block, cb = C).
    run_case(2, 4, 16, 16, case_id=0)
    # Lane-dense time axis (T multiple of 128) with multi-channel blocking.
    run_case(2, 8, 16, 128, case_id=1)
    # Forced T-split path (tiny tile budget -> Tb = 128, 3 time steps).
    run_case(1, 3, 8, 384, case_id=2, target_tile_bytes=4096)
    # bf16-native VPU path (v6e/v7x); loose tolerance for bf16 rounding.
    run_case(2, 8, 16, 128, case_id=3, dtype=jnp.bfloat16, tol=5e-2)

    print("KERNEL_OK")
</pallas_src>

<mosaic_0001>
module attributes {stable_mosaic.version = 11 : i64} {
  func.func @_coord_att_kernel(%arg0: i32, %arg1: i32, %arg2: i32, %arg3: memref<1x4x16x16xf32, #tpu.memory_space<vmem>>, %arg4: memref<1x4x16x1xf32, #tpu.memory_space<vmem>>, %arg5: memref<1x4x1x16xf32, #tpu.memory_space<vmem>>, %arg6: memref<1x4x16x16xf32, #tpu.memory_space<vmem>>) attributes {dimension_semantics = [#tpu.dimension_semantics<parallel>, #tpu.dimension_semantics<parallel>, #tpu.dimension_semantics<parallel>], iteration_bounds = array<i64: 2, 1, 1>, scalar_prefetch = 0 : i64, scratch_operands = 0 : i64, tpu.core_type = #tpu.core_type<tc>, window_params = [{transform_indices = @transform_0, window_bounds = array<i64: 1, 4, 16, 16>}, {transform_indices = @transform_1, window_bounds = array<i64: 1, 4, 16, 1>}, {transform_indices = @transform_2, window_bounds = array<i64: 1, 4, 1, 16>}, {transform_indices = @transform_3, window_bounds = array<i64: 1, 4, 16, 16>}]} {
    %c0 = arith.constant 0 : index
    %c0_0 = arith.constant 0 : index
    %c0_1 = arith.constant 0 : index
    %c0_2 = arith.constant 0 : index
    %0 = vector.load %arg4[%c0, %c0_0, %c0_1, %c0_2] : memref<1x4x16x1xf32, #tpu.memory_space<vmem>>, vector<1x4x16x1xf32>
    %1 = arith.negf %0 : vector<1x4x16x1xf32>
    %2 = math.exp %1 : vector<1x4x16x1xf32>
    %cst = arith.constant 1.000000e+00 : f32
    %3 = vector.broadcast %cst : f32 to vector<1x4x16x1xf32>
    %4 = arith.addf %3, %2 : vector<1x4x16x1xf32>
    %5 = arith.divf %3, %4 : vector<1x4x16x1xf32>
    %c0_3 = arith.constant 0 : index
    %c0_4 = arith.constant 0 : index
    %c0_5 = arith.constant 0 : index
    %c0_6 = arith.constant 0 : index
    %6 = vector.load %arg5[%c0_3, %c0_4, %c0_5, %c0_6] : memref<1x4x1x16xf32, #tpu.memory_space<vmem>>, vector<1x4x1x16xf32>
    %7 = arith.negf %6 : vector<1x4x1x16xf32>
    %8 = math.exp %7 : vector<1x4x1x16xf32>
    %cst_7 = arith.constant 1.000000e+00 : f32
    %9 = vector.broadcast %cst_7 : f32 to vector<1x4x1x16xf32>
    %10 = arith.addf %9, %8 : vector<1x4x1x16xf32>
    %11 = arith.divf %9, %10 : vector<1x4x1x16xf32>
    %c0_8 = arith.constant 0 : index
    %c0_9 = arith.constant 0 : index
    %c0_10 = arith.constant 0 : index
    %c0_11 = arith.constant 0 : index
    %12 = vector.load %arg3[%c0_8, %c0_9, %c0_10, %c0_11] : memref<1x4x16x16xf32, #tpu.memory_space<vmem>>, vector<1x4x16x16xf32>
    %13 = vector.broadcast %5 : vector<1x4x16x1xf32> to vector<1x4x16x16xf32>
    %14 = arith.mulf %12, %13 : vector<1x4x16x16xf32>
    %15 = vector.broadcast %11 : vector<1x4x1x16xf32> to vector<1x4x16x16xf32>
    %16 = arith.mulf %14, %15 : vector<1x4x16x16xf32>
    %c0_12 = arith.constant 0 : index
    %c0_13 = arith.constant 0 : index
    %c0_14 = arith.constant 0 : index
    %c0_15 = arith.constant 0 : index
    %17 = vector.load %arg6[%c0_12, %c0_13, %c0_14, %c0_15] : memref<1x4x16x16xf32, #tpu.memory_space<vmem>>, vector<1x4x16x16xf32>
    tpu.vector_store %arg6[%c0_12, %c0_13, %c0_14, %c0_15], %16 {strides = array<i32>} : memref<1x4x16x16xf32, #tpu.memory_space<vmem>>, vector<1x4x16x16xf32>,
    return
  }
  func.func @transform_0(%arg0: i32, %arg1: i32, %arg2: i32) -> (i32, i32, i32, i32) {
    %c0_i32 = arith.constant 0 : i32
    %c0_i32_0 = arith.constant 0 : i32
    return %arg0, %arg1, %c0_i32, %arg2 : i32, i32, i32, i32
  }
  func.func @transform_1(%arg0: i32, %arg1: i32, %arg2: i32) -> (i32, i32, i32, i32) {
    %c0_i32 = arith.constant 0 : i32
    %c0_i32_0 = arith.constant 0 : i32
    %c0_i32_1 = arith.constant 0 : i32
    return %arg0, %arg1, %c0_i32, %c0_i32_0 : i32, i32, i32, i32
  }
  func.func @transform_2(%arg0: i32, %arg1: i32, %arg2: i32) -> (i32, i32, i32, i32) {
    %c0_i32 = arith.constant 0 : i32
    %c0_i32_0 = arith.constant 0 : i32
    return %arg0, %arg1, %c0_i32, %arg2 : i32, i32, i32, i32
  }
  func.func @transform_3(%arg0: i32, %arg1: i32, %arg2: i32) -> (i32, i32, i32, i32) {
    %c0_i32 = arith.constant 0 : i32
    %c0_i32_0 = arith.constant 0 : i32
    return %arg0, %arg1, %c0_i32, %arg2 : i32, i32, i32, i32
  }
}

</mosaic_0001>

<bundles_post_ra>
// kernel: tpu_custom_call.1
= control target key start
LH: loop header
LB: loop body
LE: loop exit
PB: predicated region body
PF: predicated region fallthrough
CT: control target
= control target key end

     0   :  { %8 = vsyncpa [#allocation3], 0  ;;  %s1310_s0 = inlined_call_operand.vmem [shape: f32[2,4,16,16], index: 0, kind: input, shape index: {}]   ;;  %s1311_s1 = inlined_call_operand.vmem [shape: f32[2,4,16,1], index: 1, kind: input, shape index: {}]   ;;  %s1312_s2 = inlined_call_operand.vmem [shape: f32[2,4,1,16], index: 2, kind: input, shape index: {}]   ;;  %s1313_s3 = inlined_call_operand.hbm [shape: f32[2,4,16,16], index: 3, kind: output, shape index: {}]  }
   0x1   :  { %10 = vsyncpa [#allocation3 + $0x1], 0  ;;  %s1022_s12 = smov 0   ;;  %s1024_s13 = smov 0  }
   0x2   :  { %s1026_s14 = smov 0   ;;  %s1028_s15 = smov 0  }
   0x3   :  { %s1030_s16 = smov 0   ;;  %s1032_s17 = smov 0  }
   0x4 LB: > { %s779_s18 = sadd.s32 4294967295, %s997_s17   ;;  %s780_s19 = sadd.s32 4294967294, %s997_s17   ;;  %s997_s17 = sphi %s1032_s17, %s16_s17   ;;  %s993_s16 = sphi %s1030_s16, %s1342_s16   ;;  %s989_s15 = sphi %s1028_s15, %s1341_s15   ;;  %s985_s14 = sphi %s1026_s14, %s1340_s14   ;;  %s981_s13 = sphi %s1024_s13, %s1339_s13   ;;  %s977_s12 = sphi %s1022_s12, %s1338_s12  }
   0x5   : > { %s35_s20 = sadd.s32 1, %s993_s16  ;;  %s134_s21 = sadd.s32 1, %s985_s14 }
   0x6   : > { %p37_p0 = scmp.ge.s32.totalorder %s35_s20, 2  ;;  %p144_p1 = scmp.ne.s32.totalorder %s985_s14, %s981_s13 }
   0x7   : > { %p145_p2 = scmp.eq.s32.totalorder %s779_s18, 1  ;;  %p150_p3 = scmp.ne.s32.totalorder %s981_s13, %s977_s12 }
   0x8   : > { %s1344_s20 = smov (%p37_p0, %s35_s20), 0  ;;  %p151_p5 = scmp.eq.s32.totalorder %s780_s19, 1 }
   0x9   : > { %p1062_p4 = por %p145_p2, %p144_p1  ;;  %s127_s23 = ssub.s32 %s993_s16, %s1344_s20 }
   0xa   : > { %p783_p6 = scmp.ge.s32.totalorder %s997_s17, 1  ;;  %p132_p7 = scmp.eq.s32.totalorder %s127_s23, 0 }
   0xb   : > { %p1069_p8 = por %p151_p5, %p150_p3  ;;  %p215_p9 = scmp.lt.s32.totalorder %s997_s17, 3 }
   0xc   : > { %s1075_s25 = scalar_select %p132_p7, %s985_s14, %s134_s21  }
   0xd   : > { %p216_p10 = pnand %p783_p6, %p215_p9 }
   0xe   : > { %p269_p11 = scmp.lt.s32.totalorder (!%p216_p10), %s989_s15, 1  ;;  %s265_s11 = sand.u32 (!%p216_p10), 1, %s981_s13  }
   0xf   : > { %219 = sbr.rel (%p216_p10) target bundleno = 193 (0xc1), region = 32  ;;  %s784_s18 = sshll.u32 (!%p216_p10), %s265_s11, 6 }
  0x10   : > { %s1240_s19 = scalar_lea.vmem (!%p216_p10), [#allocation2], %s784_s18  ;;  %s809_s21 = sshll.u32 (!%p216_p10), %s989_s15, 6 }
  0x11   : > { %s648_s28 = sshll.u32 (!%p216_p10), %s1240_s19, 4  ;;  %s632_s29 = scalar_lea.sflag (!%p216_p10), [#allocation3], %s265_s11  ;;  %s649_s28 = int_to_ptr.vmem [resolvable:$true] %s648_s28 }
  0x14   : > { %v999_v0 = vmov 0   ;;  %s1079_s26 = scalar_select %p269_p11, %s989_s15, 1 }
  0x15   : > { %869 = vset.pattern.permute.xlu1 %v999_v0  ;;  %868 = vset.pattern.permute.xlu0 %v999_v0 }
  0x16   : > { %870 = vset.pattern.permute.xlu2 %v999_v0  ;;  %s807_s27 = sshll.u32 %s1079_s26, 6  ;;  %s789_s4 = sshll.u32 %s1079_s26, 2 }
  0x17   : > { %s291_s30 = scalar_lea.vmem %s1311_s1, %s807_s27  ;;  %s303_s7 = scalar_lea.vmem %s1312_s2, %s789_s4 }
  0x18   : > { %v308_v1 = vld [vmem:[%s291_s30 + $0x10] sm:$0xff]  ;;  %v306_v2 = vld [vmem:[%s291_s30] sm:$0xff]  ;;  %v309_v3 = vld [vmem:[%s291_s30 + $0x18] sm:$0xff]  ;;  %s1223_s10 = scalar_lea.vmem %s1310_s0, %s807_s27  ;;  %s647_s27 = scalar_lea.hbm %s1313_s3, %s809_s21 }
  0x19   : > { %v792_v4 = vmul.f32 -1.442695, %v308_v1  ;;  %v790_v5 = vmul.f32 -1.442695, %v306_v2  ;;  %v793_v6 = vmul.f32 -1.442695, %v309_v3 }
  0x1a   : > { %v307_v7 = vld [vmem:[%s291_s30 + $0x8] sm:$0xff]  ;;  %v313_v8 = vld [vmem:[%s291_s30 + $0x38] sm:$0xff]  ;;  %v312_v9 = vld [vmem:[%s291_s30 + $0x30] sm:$0xff]  ;;  %s650_s15 = sshll.u32 %s647_s27, 4  ;;  %s651_s15 = int_to_ptr.hbm [resolvable:$true] %s650_s15 }
  0x1b   : > { %871 = vpow2.f32 %v792_v4  ;;  %v791_v10 = vmul.f32 -1.442695, %v307_v7  ;;  %v797_v11 = vmul.f32 -1.442695, %v313_v8  ;;  %v796_v12 = vmul.f32 -1.442695, %v312_v9 }
  0x1c   : > { %873 = vpow2.f32 %v790_v5  ;;  %v310_v13 = vld [vmem:[%s291_s30 + $0x20] sm:$0xff]  ;;  %v311_v14 = vld [vmem:[%s291_s30 + $0x28] sm:$0xff]  ;;  %s933_s30 = sshra.s32 %s651_s15, 4  ;;  %s934_s30 = int_to_ptr.hbm [resolvable:$true] %s933_s30 }
  0x1d   : > { %875 = vpow2.f32 %v793_v6  ;;  %v794_v18 = vmul.f32 -1.442695, %v310_v13  ;;  %v795_v21 = vmul.f32 -1.442695, %v311_v14  ;;  %v468_v58 = vld [vmem:[%s303_s7 + $0x2] sm:$0x1]  ;;  %p940_p1 = scmp.lt.s32.totalorder %s934_s30, %s1313_s3 }
  0x1e   : > { %877 = vpow2.f32 %v791_v10  ;;  %s935_s4 = scalar_lea.hbm %s934_s30, 64 }
  0x1f   : > { %879 = vpow2.f32 %v797_v11  ;;  %p936_p12 = scmp.ne.s32.totalorder %s934_s30, %s935_s4 }
  0x20   : > { %881 = vpow2.f32 %v796_v12 }
  0x21   : > { %v872_v15 = vpop.eup %871  ;;  %p937_p13 = pnand %p936_p12, %p1062_p4 }
  0x22   : > { %v874_v16 = vpop.eup %873  ;;  %v340_v17 = vadd.f32 1.0, %v872_v15 }
  0x23   : > { %v876_v19 = vpop.eup %875  ;;  %v338_v20 = vadd.f32 1.0, %v874_v16  ;;  %p938_p0 = pneg %p937_p13 }
  0x24   : > { %v878_v22 = vpop.eup %877  ;;  %883 = vrcp.f32 %v340_v17  ;;  %v1087_v25 = vadd.f32 1.0, %v876_v19  ;;  %v385_v28 = vand.u32 2147483647, %v340_v17  ;;  %v387_v29 = vand.u32 2147483648, %v340_v17 }
  0x25   : > { %v880_v23 = vpop.eup %879  ;;  %885 = vrcp.f32 %v338_v20  ;;  %v1089_v26 = vadd.f32 1.0, %v878_v22  ;;  %v355_v30 = vand.u32 2147483647, %v338_v20  ;;  %v357_v31 = vand.u32 2147483648, %v338_v20 }
  0x26   : > { %v882_v24 = vpop.eup %881  ;;  %887 = vpow2.f32 %v794_v18  ;;  %v1091_v27 = vadd.f32 1.0, %v880_v23  ;;  %vm381_vm0 = vweird.f32 %v340_v17  ;;  %vm351_vm1 = vweird.f32 %v338_v20 }
  0x27   : > { %889 = vpow2.f32 %v795_v21  ;;  %v1095_v32 = vadd.f32 1.0, %v882_v24  ;;  %vm1098_vm2 = vcmp.eq.f32.partialorder %v385_v28, 8.507059e+37  ;;  %v388_v38 = vor.u32 1.1754944e-38, %v387_v29 }
  0x28   : > { %891 = vrcp.f32 %v1087_v25  ;;  %vm1102_vm3 = vcmp.eq.f32.partialorder %v355_v30, 8.507059e+37  ;;  %v358_v43 = vor.u32 1.1754944e-38, %v357_v31  ;;  %vm396_vm6 = vweird.f32 %v1087_v25 }
  0x29   : > { %893 = vrcp.f32 %v1089_v26  ;;  %v400_v46 = vand.u32 2147483647, %v1087_v25  ;;  %v402_v50 = vand.u32 2147483648, %v1087_v25  ;;  %vm366_vm7 = vweird.f32 %v1089_v26 }
  0x2a   : > { %v884_v33 = vpop.eup %883  ;;  %895 = vrcp.f32 %v1091_v27  ;;  %v370_v55 = vand.u32 2147483647, %v1089_v26  ;;  %v372_v56 = vand.u32 2147483648, %v1089_v26  ;;  %v460_v21 = vand.u32 2147483647, %v1091_v27 }
  0x2b   : > { %v886_v34 = vpop.eup %885  ;;  %v377_v35 = vmul.f32 %v884_v33, %v340_v17  ;;  %vm382_vm4 = vweird.f32 %v884_v33  ;;  %897 = vrcp.f32 %v1095_v32  ;;  %v403_v13 = vor.u32 1.1754944e-38, %v402_v50 }
  0x2c   : > { %v888_v36 = vpop.eup %887  ;;  %v347_v39 = vmul.f32 %v886_v34, %v338_v20  ;;  %vm352_vm5 = vweird.f32 %v886_v34  ;;  %vm1115_vm8 = vmor %vm381_vm0, %vm382_vm4  ;;  %vm401_vm14 = vcmp.eq.f32.partialorder %v400_v46, 8.507059e+37  ;;  %v373_v17 = vor.u32 1.1754944e-38, %v372_v56 }
  0x2d   : > { %v890_v41 = vpop.eup %889  ;;  %v378_v42 = vsub.f32 1.0, %v377_v35  ;;  %vm1124_vm9 = vmor %vm351_vm1, %vm352_vm5  ;;  %v1130_v63 = vadd.f32 1.0, %v888_v36  ;;  %vm371_vm15 = vcmp.eq.f32.partialorder %v370_v55, 8.507059e+37  ;;  %vm456_vm0 = vweird.f32 %v1091_v27 }
  0x2e   : > { %v892_v44 = vpop.eup %891  ;;  %v348_v45 = vsub.f32 1.0, %v347_v39  ;;  %v1136_v4 = vadd.f32 1.0, %v890_v41  ;;  %v462_v22 = vand.u32 2147483648, %v1091_v27  ;;  %v447_v24 = vand.u32 2147483648, %v1095_v32 }
  0x2f   : > { %v894_v47 = vpop.eup %893  ;;  %v379_v48 = vmul.f32 %v884_v33, %v378_v42  ;;  %v392_v49 = vmul.f32 %v892_v44, %v1087_v25  ;;  %vm397_vm10 = vweird.f32 %v892_v44  ;;  %899 = vrcp.f32 %v1130_v63 }
  0x30   : > { %v1112_v51 = vpop.eup %895  ;;  %v349_v53 = vmul.f32 %v886_v34, %v348_v45  ;;  %v362_v54 = vmul.f32 %v894_v47, %v1089_v26  ;;  %vm367_vm11 = vweird.f32 %v894_v47  ;;  %vm1144_vm12 = vmor %vm396_vm6, %vm397_vm10  ;;  %901 = vrcp.f32 %v1136_v4 }
  0x31   : > { %v380_v57 = vadd.f32 %v884_v33, %v379_v48  ;;  %v393_v59 = vsub.f32 1.0, %v392_v49  ;;  %v452_v60 = vmul.f32 %v1112_v51, %v1091_v27  ;;  %v1132_v0 = vpop.eup %897  ;;  %vm1155_vm13 = vmor %vm366_vm7, %vm367_vm11  ;;  %vm457_vm1 = vweird.f32 %v1112_v51 }
  0x32   : > { %v350_v61 = vadd.f32 %v886_v34, %v349_v53  ;;  %v363_v62 = vsub.f32 1.0, %v362_v54  ;;  %v437_v9 = vmul.f32 %v1132_v0, %v1095_v32  ;;  %vm1175_vm4 = vmor %vm456_vm0, %vm457_vm1  ;;  %v445_v31 = vand.u32 2147483647, %v1095_v32 }
  0x33   : > { %v384_v1 = vsel %vm1115_vm8, %v884_v33, %v380_v57  ;;  %v394_v2 = vmul.f32 %v892_v44, %v393_v59  ;;  %v453_v3 = vsub.f32 1.0, %v452_v60  ;;  %vm1181_vm5 = vcmp.eq.f32.partialorder %v460_v21, 8.507059e+37  ;;  %v467_v60 = vld [vmem:[%s303_s7 + $0x1] sm:$0x1] }
  0x34   : > { %v389_v5 = vsel %vm1098_vm2, %v388_v38, %v384_v1  ;;  %v354_v6 = vsel %vm1124_vm9, %v886_v34, %v350_v61  ;;  %v364_v8 = vmul.f32 %v894_v47, %v363_v62  ;;  %v438_v15 = vsub.f32 1.0, %v437_v9  ;;  %v466_v61 = vld [vmem:[%s303_s7] sm:$0x1] }
  0x35   : > { %566 = vperm.xlu1 %869, %v389_v5   ;;  %v359_v10 = vsel %vm1102_vm3, %v358_v43, %v354_v6  ;;  %v395_v11 = vadd.f32 %v892_v44, %v394_v2  ;;  %v454_v18 = vmul.f32 %v1112_v51, %v453_v3  ;;  %vm441_vm2 = vweird.f32 %v1095_v32  ;;  %v900_v28 = vpop.eup %899  ;;  %v469_v5 = vld [vmem:[%s303_s7 + $0x3] sm:$0x1]  ;;  %s939_s7 = scalar_lea.hbm %s1313_s3, 128 }
  0x36   : > { %556 = vperm.xlu0 %868, %v359_v10   ;;  %v365_v14 = vadd.f32 %v894_v47, %v364_v8  ;;  %v439_v20 = vmul.f32 %v1132_v0, %v438_v15  ;;  %vm442_vm3 = vweird.f32 %v1132_v0  ;;  %v463_v33 = vor.u32 1.1754944e-38, %v462_v22  ;;  %v902_v36 = vpop.eup %901  ;;  %p941_p2 = scmp.lt.s32.totalorder %s939_s7, %s935_s4 }
  0x37   : > { %v399_v16 = vsel %vm1144_vm12, %v892_v44, %v395_v11  ;;  %v455_v26 = vadd.f32 %v1112_v51, %v454_v18  ;;  %vm1185_vm6 = vmor %vm441_vm2, %vm442_vm3  ;;  %v407_v35 = vmul.f32 %v900_v28, %v1130_v63  ;;  %v448_v37 = vor.u32 1.1754944e-38, %v447_v24 }
  0x38   : > { %v369_v19 = vsel %vm1155_vm13, %v894_v47, %v365_v14  ;;  %v404_v23 = vsel %vm401_vm14, %v403_v13, %v399_v16  ;;  %v440_v30 = vadd.f32 %v1132_v0, %v439_v20  ;;  %vm411_vm7 = vweird.f32 %v1130_v63  ;;  %p942_p3 = por %p941_p2, %p940_p1 }
  0x39   : > { %v374_v25 = vsel %vm371_vm15, %v373_v17, %v369_v19  ;;  %v415_v38 = vand.u32 2147483647, %v1130_v63  ;;  %v417_v32 = vand.u32 2147483648, %v1130_v63  ;;  %v459_v39 = vsel %vm1175_vm4, %v1112_v51, %v455_v26 }
  0x3a   : > { %v408_v40 = vsub.f32 1.0, %v407_v35  ;;  %vm412_vm8 = vweird.f32 %v900_v28  ;;  %v422_v41 = vmul.f32 %v902_v36, %v1136_v4  ;;  %v444_v42 = vsel %vm1185_vm6, %v1132_v0, %v440_v30  ;;  %p943_p5 = pnand %p942_p3, %p938_p0 }
  0x3b   : > { %vm446_vm9 = vcmp.eq.f32.partialorder %v445_v31, 8.507059e+37  ;;  %v464_v45 = vsel %vm1181_vm5, %v463_v33, %v459_v39  ;;  %vm413_vm10 = vmor %vm411_vm7, %vm412_vm8  ;;  %vm416_vm11 = vcmp.eq.f32.partialorder %v415_v38, 8.507059e+37  ;;  %v418_v46 = vor.u32 1.1754944e-38, %v417_v32  ;;  %v550_v32 = vld [vmem:[%s1223_s10 + $0x20] sm:$0xff] }
  0x3c   : > { %v409_v43 = vmul.f32 %v900_v28, %v408_v40  ;;  %v423_v44 = vsub.f32 1.0, %v422_v41  ;;  %vm426_vm12 = vweird.f32 %v1136_v4  ;;  %v449_v47 = vsel %vm446_vm9, %v448_v37, %v444_v42 }
  0x3d   : > { %571 = vperm.xlu1 %869, %v404_v23   ;;  %vm427_vm13 = vweird.f32 %v902_v36  ;;  %v432_v50 = vand.u32 2147483648, %v1136_v4  ;;  %v430_v53 = vand.u32 2147483647, %v1136_v4  ;;  %v800_v59 = vmul.f32 -1.442695, %v468_v58 }
  0x3e   : > { %561 = vperm.xlu0 %868, %v374_v25   ;;  %v410_v48 = vadd.f32 %v900_v28, %v409_v43  ;;  %v424_v49 = vmul.f32 %v902_v36, %v423_v44  ;;  %vm428_vm14 = vmor %vm426_vm12, %vm427_vm13  ;;  %v799_v62 = vmul.f32 -1.442695, %v467_v60  ;;  %v798_v63 = vmul.f32 -1.442695, %v466_v61 }
  0x3f   : > { %v433_v55 = vor.u32 1.1754944e-38, %v432_v50  ;;  %vm431_vm15 = vcmp.eq.f32.partialorder %v430_v53, 8.507059e+37  ;;  %903 = vpow2.f32 %v800_v59  ;;  %v801_v8 = vmul.f32 -1.442695, %v469_v5  ;;  %v548_v50 = vld [vmem:[%s1223_s10 + $0x10] sm:$0xff]  ;;  %v547_v5 = vld [vmem:[%s1223_s10 + $0x8] sm:$0xff] }
  0x40   : > { %v414_v51 = vsel %vm413_vm10, %v900_v28, %v410_v48  ;;  %v425_v52 = vadd.f32 %v902_v36, %v424_v49  ;;  %905 = vpow2.f32 %v799_v62  ;;  %vm622_vm12 = vcmask 130048  }
  0x41   : > { %v419_v54 = vsel %vm416_vm11, %v418_v46, %v414_v51  ;;  %907 = vpow2.f32 %v798_v63 }
  0x42   : > { %576 = vperm.xlu2 %870, %v419_v54   ;;  %v429_v56 = vsel %vm428_vm14, %v902_v36, %v425_v52  ;;  %v546_v52 = vld [vmem:[%s1223_s10] sm:$0xff] }
  0x43   : > { %v434_v57 = vsel %vm431_vm15, %v433_v55, %v429_v56  ;;  %v551_v55 = vld [vmem:[%s1223_s10 + $0x28] sm:$0xff] }
  0x45   : > { %591 = vperm.xlu1 %869, %v464_v45   ;;  %v904_v0 = vpop.eup %903 }
  0x46   : > { %586 = vperm.xlu0 %868, %v449_v47   ;;  %v484_v1 = vadd.f32 1.0, %v904_v0  ;;  %v906_v2 = vpop.eup %905 }
  0x47   : > { %v908_v3 = vpop.eup %907  ;;  %v483_v4 = vadd.f32 1.0, %v906_v2 }
  0x48   : > { %909 = vrcp.f32 %v484_v1  ;;  %v482_v6 = vadd.f32 1.0, %v908_v3  ;;  %vm521_vm0 = vweird.f32 %v484_v1  ;;  %v527_v18 = vand.u32 2147483648, %v484_v1 }
  0x49   : > { %911 = vrcp.f32 %v483_v4  ;;  %v525_v21 = vand.u32 2147483647, %v484_v1  ;;  %vm506_vm4 = vweird.f32 %v483_v4  ;;  %v512_v28 = vand.u32 2147483648, %v483_v4 }
  0x4a   : > { %581 = vperm.xlu2 %870, %v434_v57   ;;  %913 = vrcp.f32 %v482_v6  ;;  %v528_v23 = vor.u32 1.1754944e-38, %v527_v18  ;;  %vm491_vm6 = vweird.f32 %v482_v6  ;;  %v510_v31 = vand.u32 2147483647, %v483_v4 }
  0x4b   : > { %915 = vpow2.f32 %v801_v8  ;;  %vm526_vm3 = vcmp.eq.f32.partialorder %v525_v21, 8.507059e+37  ;;  %v497_v27 = vand.u32 2147483648, %v482_v6  ;;  %v495_v36 = vand.u32 2147483647, %v482_v6 }
  0x4c   : > { %v513_v39 = vor.u32 1.1754944e-38, %v512_v28  ;;  %vm511_vm10 = vcmp.eq.f32.partialorder %v510_v31, 8.507059e+37 }
  0x4d   : > { %v498_v41 = vor.u32 1.1754944e-38, %v497_v27  ;;  %vm496_vm11 = vcmp.eq.f32.partialorder %v495_v36, 8.507059e+37 }
  0x4e   : > { %v910_v7 = vpop.eup %909 }
  0x4f   : > { %v517_v9 = vmul.f32 %v910_v7, %v484_v1  ;;  %v912_v10 = vpop.eup %911  ;;  %vm522_vm1 = vweird.f32 %v910_v7 }
  0x50   : > { %v914_v12 = vpop.eup %913  ;;  %v502_v14 = vmul.f32 %v912_v10, %v483_v4  ;;  %vm523_vm2 = vmor %vm521_vm0, %vm522_vm1  ;;  %vm507_vm5 = vweird.f32 %v912_v10  ;;  %v549_v4 = vld [vmem:[%s1223_s10 + $0x18] sm:$0xff] }
  0x51   : > { %v518_v11 = vsub.f32 1.0, %v517_v9  ;;  %v916_v13 = vpop.eup %915  ;;  %v487_v16 = vmul.f32 %v914_v12, %v482_v6  ;;  %vm492_vm7 = vweird.f32 %v914_v12  ;;  %vm1214_vm8 = vmor %vm506_vm4, %vm507_vm5 }
  0x52   : > { %v1209_v17 = vadd.f32 1.0, %v916_v13  ;;  %v503_v19 = vsub.f32 1.0, %v502_v14  ;;  %vm1225_vm9 = vmor %vm491_vm6, %vm492_vm7 }
  0x53   : > { %v519_v15 = vmul.f32 %v910_v7, %v518_v11  ;;  %v488_v22 = vsub.f32 1.0, %v487_v16 }
  0x54   : > { %917 = vrcp.f32 %v1209_v17  ;;  %v504_v24 = vmul.f32 %v912_v10, %v503_v19  ;;  %vm536_vm13 = vweird.f32 %v1209_v17  ;;  %v542_v0 = vand.u32 2147483648, %v1209_v17 }
  0x55   : > { %v520_v20 = vadd.f32 %v910_v7, %v519_v15  ;;  %v489_v26 = vmul.f32 %v914_v12, %v488_v22  ;;  %v540_v3 = vand.u32 2147483647, %v1209_v17  ;;  %v553_v15 = vld [vmem:[%s1223_s10 + $0x38] sm:$0xff] }
  0x56   : > { %v505_v30 = vadd.f32 %v912_v10, %v504_v24 }
  0x57   : > { %v524_v25 = vsel %vm523_vm2, %v910_v7, %v520_v20  ;;  %v490_v35 = vadd.f32 %v914_v12, %v489_v26  ;;  %v543_v7 = vor.u32 1.1754944e-38, %v542_v0  ;;  %vm541_vm0 = vcmp.eq.f32.partialorder %v540_v3, 8.507059e+37 }
  0x58   : > { %v529_v29 = vsel %vm526_vm3, %v528_v23, %v524_v25  ;;  %v509_v40 = vsel %vm1214_vm8, %v912_v10, %v505_v30 }
  0x59   : > { %v608_v38 = vperm.slane %v529_v29, 0  ;;  %v494_v44 = vsel %vm1225_vm9, %v914_v12, %v490_v35  ;;  %v514_v46 = vsel %vm511_vm10, %v513_v39, %v509_v40 }
  0x5a   : > { %v1212_v33 = vpop.eup %917  ;;  %v499_v48 = vsel %vm496_vm11, %v498_v41, %v494_v44  ;;  %v607_v51 = vperm.slane %v514_v46, 0 }
  0x5b   : > { %v532_v42 = vmul.f32 %v1212_v33, %v1209_v17  ;;  %v606_v54 = vperm.slane %v499_v48, 0  ;;  %vm537_vm14 = vweird.f32 %v1212_v33  ;;  %v552_v17 = vld [vmem:[%s1223_s10 + $0x30] sm:$0xff] }
  0x5c   : > { %vm538_vm15 = vmor %vm536_vm13, %vm537_vm14 }
  0x5d   : > { %v533_v49 = vsub.f32 1.0, %v532_v42 }
  0x5f   : > { %v534_v58 = vmul.f32 %v1212_v33, %v533_v49 }
  0x61   : > { %v535_v2 = vadd.f32 %v1212_v33, %v534_v58 }
  0x63   : > { %v539_v10 = vsel %vm538_vm15, %v1212_v33, %v535_v2 }
  0x64   : > { %v544_v14 = vsel %vm541_vm0, %v543_v7, %v539_v10 }
  0x65   : > { %v609_v16 = vperm.slane %v544_v14, 0 }
  0x9c   : > { %v577_v43 = vpop.permute.xlu2 %576 }
  0x9d   : > { %v598_v45 = vmul.f32 %v577_v43, %v550_v32 }
  0x9f   : > { %v618_v47 = vmul.f32 %v608_v38, %v598_v45 }
  0xa1   : > { %627 = vst.msk [vmem:[%s1240_s19 + $0x20] sm:$0xff] %vm622_vm12, %v618_v47 }
  0xa4   : > { %v582_v60 = vpop.permute.xlu2 %581 }
  0xa5   : > { %v599_v62 = vmul.f32 %v582_v60, %v551_v55 }
  0xa7   : > { %v567_v53 = vpop.permute.xlu1 %566  ;;  %v619_v1 = vmul.f32 %v608_v38, %v599_v62 }
  0xa8   : > { %v596_v56 = vmul.f32 %v567_v53, %v548_v50  ;;  %v557_v57 = vpop.permute.xlu0 %556 }
  0xa9   : > { %v594_v59 = vmul.f32 %v557_v57, %v546_v52  ;;  %628 = vst.msk [vmem:[%s1240_s19 + $0x28] sm:$0xff] %vm622_vm12, %v619_v1 }
  0xaa   : > { %v616_v61 = vmul.f32 %v607_v51, %v596_v56 }
  0xab   : > { %v614_v63 = vmul.f32 %v606_v54, %v594_v59 }
  0xac   : > { %625 = vst.msk [vmem:[%s1240_s19 + $0x10] sm:$0xff] %vm622_vm12, %v616_v61 }
  0xad   : > { %623 = vst.msk [vmem:[%s1240_s19] sm:$0xff] %vm622_vm12, %v614_v63 }
  0xaf   : > { %v572_v6 = vpop.permute.xlu1 %571 }
  0xb0   : > { %v597_v8 = vmul.f32 %v572_v6, %v549_v4  ;;  %v562_v9 = vpop.permute.xlu0 %561 }
  0xb1   : > { %v595_v11 = vmul.f32 %v562_v9, %v547_v5 }
  0xb2   : > { %v617_v12 = vmul.f32 %v607_v51, %v597_v8 }
  0xb3   : > { %v615_v13 = vmul.f32 %v606_v54, %v595_v11 }
  0xb4   : > { %626 = vst.msk [vmem:[%s1240_s19 + $0x18] sm:$0xff] %vm622_vm12, %v617_v12 }
  0xb5   : > { %624 = vst.msk [vmem:[%s1240_s19 + $0x8] sm:$0xff] %vm622_vm12, %v615_v13 }
  0xb7   : > { %v592_v18 = vpop.permute.xlu1 %591 }
  0xb8   : > { %v601_v19 = vmul.f32 %v592_v18, %v553_v15  ;;  %v587_v20 = vpop.permute.xlu0 %586 }
  0xb9   : > { %v600_v21 = vmul.f32 %v587_v20, %v552_v17 }
  0xba   : > { %v621_v22 = vmul.f32 %v609_v16, %v601_v19 }
  0xbb   : > { %v620_v23 = vmul.f32 %v609_v16, %v600_v21 }
  0xbc   : > { %630 = vst.msk [vmem:[%s1240_s19 + $0x38] sm:$0xff] %vm622_vm12, %v621_v22 }
  0xbd   : > { %629 = vst.msk [vmem:[%s1240_s19 + $0x30] sm:$0xff] %vm622_vm12, %v620_v23 }
  0xbe   : > { %946 = shalt.err (!%p943_p5)
}
  0xbf   : > { %s1000_s10 = smov 128   ;;  %s1001_s11 = smov 8  }
  0xc0   : > { %810 = dma.vmem_to_hbm [thread:$0]  (%p1062_p4), %s649_s28, 1024, %s651_s15, %s632_s29, %s1000_s10, %s1000_s10, %s1001_s11  }
  0xc1 PF: > { %p816_p6 = scmp.ge.s32.totalorder %s997_s17, 2  ;;  %s665_s18 = sand.u32 1, %s977_s12  }
  0xc2   : > { %s666_s19 = scalar_lea.sflag [#allocation3], %s665_s18 }
  0xc3   : > { %p813_p7 = pnand %p816_p6, %p1069_p8 }
  0xc5   : > { %p814_p9 = pneg %p813_p7 }
  0xc7   : > { %972 = dma.done.wait (%p814_p9), %s666_s19, 1024  }
  0xc8   : > { %974 = vsyncadd (%p814_p9), %s666_s19, 4294966272  ;;  %s16_s17 = sadd.s32 1, %s997_s17   ;;  %s1338_s12 = smov %s981_s13 }
  0xc9   : > { %p13_p10 = scmp.ge.s32.totalorder %s16_s17, 4   ;;  %s1339_s13 = smov %s985_s14 }
  0xca   : > { %s1340_s14 = smov %s1075_s25  ;;  %s1341_s15 = smov %s993_s16 }
  0xcb   : > { %s1342_s16 = smov %s1344_s20  ;;  %15 = sbr.rel (!%p13_p10) target bundleno = 4 (0x4), region = 73 }
  0xd0   :  { %672 = vsyncpa [#allocation3], 1 }
  0xd1   :  { %674 = vsyncpa [#allocation3 + $0x1], 1 }

</bundles_post_ra>
